<compile_context>
chip_gen: v7x
topology: tpu7x:2x2x1
jax: 0.10.0
libtpu: 0.0.40
codegen_flags: <defaults>
</compile_context>

<pallas_src>
import jax
import jax.numpy as jnp
from jax.experimental import pallas as pl
from jax.experimental.pallas import tpu as pltpu

IN_FEATURES = 1000
OUT_FEATURES = 1000

# Lane-aligned padded dims and N tile size.
K_PAD = 1024          # 1000 -> 1024 (multiple of 128)
N_PAD = 1024          # 1000 -> 1024 (multiple of 128)
TN = 256              # 4 grid steps; large tiles keep per-step overhead tiny


def linear_kernel(x_ref, w_ref, b_ref, o_ref):
    # x_ref: (B, K_PAD), w_ref: (K_PAD, TN), b_ref: (1, TN), o_ref: (B, TN)
    o_ref[...] = (
        jnp.dot(x_ref[...], w_ref[...], preferred_element_type=jnp.float32)
        + b_ref[...]
    )


def simple_model_forward(x, w, b):
    """y = x @ w.T + b  (nn.Linear semantics).

    x: (B, IN_FEATURES) f32
    w: (OUT_FEATURES, IN_FEATURES) f32   (PyTorch layout)
    b: (OUT_FEATURES,) f32
    """
    B, K = x.shape
    N, K2 = w.shape
    assert K == K2 == IN_FEATURES and N == OUT_FEATURES and b.shape == (N,)

    # Zero-pad to lane-aligned shapes. (In a real deployment the padded,
    # transposed weight/bias would be prepared once, outside the forward.)
    x_p = jnp.pad(x, ((0, 0), (0, K_PAD - K)))                 # (B, K_PAD)
    w_t = jnp.pad(w.T, ((0, K_PAD - K), (0, N_PAD - N)))       # (K_PAD, N_PAD)
    b_p = jnp.pad(b, (0, N_PAD - N)).reshape(1, N_PAD)         # (1, N_PAD)

    # VMEM footprint per step (double-buffered): x (B*K_PAD) + w (K_PAD*TN)
    # + b (TN) + out (B*TN) floats  ->  ~2.2 MB at B=8, far under the 32 MiB
    # scoped limit on every generation (incl. v7x's 64 MiB physical VMEM).
    # TODO(synk): tile B as well if batch grows large (e.g. B >= 2048).
    out_p = pl.pallas_call(
        linear_kernel,
        out_shape=jax.ShapeDtypeStruct((B, N_PAD), jnp.float32),
        grid=(N_PAD // TN,),
        in_specs=[
            pl.BlockSpec((B, K_PAD), lambda j: (0, 0)),   # full activations
            pl.BlockSpec((K_PAD, TN), lambda j: (0, j)),  # stream weight in N
            pl.BlockSpec((1, TN), lambda j: (0, j)),      # matching bias tile
        ],
        out_specs=pl.BlockSpec((B, TN), lambda j: (0, j)),
        compiler_params=pltpu.CompilerParams(
            dimension_semantics=("parallel",),  # megacore-shard N on v7x
        ),
    )(x_p, w_t, b_p)

    return out_p[:, :N]


if __name__ == "__main__":
    key = jax.random.PRNGKey(0)
    kx, kw, kb = jax.random.split(key, 3)

    batch = 8  # small batch; feature dims fixed at 1000 by the module

    x = jax.random.normal(kx, (batch, IN_FEATURES), dtype=jnp.float32)

    # Deterministic param init mimicking nn.Linear default (U(-1/sqrt(fan_in), +)).
    bound = 1.0 / (IN_FEATURES ** 0.5)
    w = jax.random.uniform(kw, (OUT_FEATURES, IN_FEATURES), dtype=jnp.float32,
                           minval=-bound, maxval=bound)
    b = jax.random.uniform(kb, (OUT_FEATURES,), dtype=jnp.float32,
                           minval=-bound, maxval=bound)

    y = simple_model_forward(x, w, b)
    y = jax.block_until_ready(y)

    # Sanity check against plain-JAX reference (nn.Linear: x @ W^T + b).
    y_ref = x @ w.T + b
    assert y.shape == (batch, OUT_FEATURES)
    assert jnp.allclose(y, y_ref, atol=1e-3, rtol=1e-3)

    print("KERNEL_OK")
</pallas_src>

<mosaic_0001>
module attributes {stable_mosaic.version = 11 : i64} {
  func.func @linear_kernel(%arg0: i32, %arg1: memref<8x1024xf32, #tpu.memory_space<vmem>>, %arg2: memref<1024x256xf32, #tpu.memory_space<vmem>>, %arg3: memref<1x256xf32, #tpu.memory_space<vmem>>, %arg4: memref<8x256xf32, #tpu.memory_space<vmem>>) attributes {dimension_semantics = [#tpu.dimension_semantics<parallel>], iteration_bounds = array<i64: 4>, scalar_prefetch = 0 : i64, scratch_operands = 0 : i64, tpu.core_type = #tpu.core_type<tc>, window_params = [{pipeline_mode = #tpu.pipeline_mode<synchronous>, transform_indices = @transform_0, window_bounds = array<i64: 8, 1024>}, {transform_indices = @transform_1, window_bounds = array<i64: 1024, 256>}, {transform_indices = @transform_2, window_bounds = array<i64: 1, 256>}, {transform_indices = @transform_3, window_bounds = array<i64: 8, 256>}]} {
    %c0 = arith.constant 0 : index
    %c0_0 = arith.constant 0 : index
    %0 = vector.load %arg1[%c0, %c0_0] : memref<8x1024xf32, #tpu.memory_space<vmem>>, vector<8x1024xf32>
    %c0_1 = arith.constant 0 : index
    %c0_2 = arith.constant 0 : index
    %1 = vector.load %arg2[%c0_1, %c0_2] : memref<1024x256xf32, #tpu.memory_space<vmem>>, vector<1024x256xf32>
    %cst = arith.constant dense<0.000000e+00> : vector<8x256xf32>
    %2 = tpu.matmul %0, %1, %cst {dimension_numbers = #tpu.dot_dimension_numbers<[1], [0], [0], [1], [0, 0, 1, 1], [], []>} : vector<8x1024xf32>, vector<1024x256xf32>, vector<8x256xf32> -> vector<8x256xf32>
    %c0_3 = arith.constant 0 : index
    %c0_4 = arith.constant 0 : index
    %3 = vector.load %arg3[%c0_3, %c0_4] : memref<1x256xf32, #tpu.memory_space<vmem>>, vector<1x256xf32>
    %4 = vector.broadcast %3 : vector<1x256xf32> to vector<8x256xf32>
    %5 = arith.addf %2, %4 : vector<8x256xf32>
    %c0_5 = arith.constant 0 : index
    %c0_6 = arith.constant 0 : index
    %6 = vector.load %arg4[%c0_5, %c0_6] : memref<8x256xf32, #tpu.memory_space<vmem>>, vector<8x256xf32>
    tpu.vector_store %arg4[%c0_5, %c0_6], %5 {strides = array<i32>} : memref<8x256xf32, #tpu.memory_space<vmem>>, vector<8x256xf32>,
    return
  }
  func.func @transform_0(%arg0: i32) -> (i32, i32) {
    %c0_i32 = arith.constant 0 : i32
    %c0_i32_0 = arith.constant 0 : i32
    %c0_i32_1 = arith.constant 0 : i32
    return %c0_i32, %c0_i32_0 : i32, i32
  }
  func.func @transform_1(%arg0: i32) -> (i32, i32) {
    %c0_i32 = arith.constant 0 : i32
    %c0_i32_0 = arith.constant 0 : i32
    return %c0_i32, %arg0 : i32, i32
  }
  func.func @transform_2(%arg0: i32) -> (i32, i32) {
    %c0_i32 = arith.constant 0 : i32
    %c0_i32_0 = arith.constant 0 : i32
    return %c0_i32, %arg0 : i32, i32
  }
  func.func @transform_3(%arg0: i32) -> (i32, i32) {
    %c0_i32 = arith.constant 0 : i32
    %c0_i32_0 = arith.constant 0 : i32
    return %c0_i32, %arg0 : i32, i32
  }
}

</mosaic_0001>

<bundles_post_ra>
// kernel: tpu_custom_call.1
= control target key start
LH: loop header
LB: loop body
LE: loop exit
PB: predicated region body
PF: predicated region fallthrough
CT: control target
= control target key end

     0   :  { %8 = vsyncpa [#allocation3], 0  ;;  %s1949_s0 = inlined_call_operand.hbm [shape: f32[8,1024], index: 0, kind: input, shape index: {}]   ;;  %s1950_s1 = inlined_call_operand.hbm [shape: f32[1024,1024], index: 1, kind: input, shape index: {}]   ;;  %s1951_s2 = inlined_call_operand.hbm [shape: f32[1,1024], index: 2, kind: input, shape index: {}]   ;;  %s1952_s3 = inlined_call_operand.hbm [shape: f32[8,1024], index: 3, kind: output, shape index: {}]  }
   0x1   :  { %9 = vsyncpa [#allocation6], 0 }
   0x2   :  { %11 = vsyncpa [#allocation6 + $0x1], 0 }
   0x3   :  { %12 = vsyncpa [#allocation4], 0 }
   0x4   :  { %14 = vsyncpa [#allocation4 + $0x1], 0  ;;  %s1458_s12 = smov 0   ;;  %s1460_s13 = smov 0  }
   0x5   :  { %s1462_s14 = smov 0   ;;  %s1464_s15 = smov 0  }
   0x6 LB: > { %s1479_s16 = sadd.s32 1, %s1429_s15   ;;  %s48_s17 = sadd.s32 1, %s1425_s14  ;;  %s1429_s15 = sphi %s1464_s15, %s1978_s15   ;;  %s1425_s14 = sphi %s1462_s14, %s1977_s14   ;;  %s1421_s13 = sphi %s1460_s13, %s1976_s13   ;;  %s1417_s12 = sphi %s1458_s12, %s1975_s12  }
   0x7   : > { %s45_s18 = ssub.s32 %s1429_s15, %s1479_s16  ;;  %p55_p0 = scmp.ne.s32.totalorder %s1425_s14, %s1421_s13 }
   0x8   : > { %p46_p1 = scmp.eq.s32.totalorder %s45_s18, 0  ;;  %p56_p2 = scmp.eq.s32.totalorder %s1429_s15, 0 }
   0x9   : > { %p1232_p3 = scmp.lt.s32.totalorder %s1429_s15, 4  ;;  %s148_s20 = sand.u32 1, %s1429_s15  }
   0xa   : > { %s1489_s19 = scalar_select %p46_p1, %s1425_s14, %s48_s17  }
   0xb   : > { %p57_p4 = por %p56_p2, %p55_p0  ;;  %s150_s21 = sand.u32 1, %s1425_s14  }
   0xc   : > { %s923_s22 = sshll.u32 %s150_s21, 11  ;;  %s939_s23 = sshll.u32 %s1429_s15, 8 }
   0xd   : > { %s1502_s26 = scalar_lea.hbm %s1950_s1, %s939_s23  ;;  %s152_s27 = scalar_lea.vmem [#allocation5], %s923_s22 }
   0xe   : > { %s159_s28 = sshll.u32 %s152_s27, 4  ;;  %p1504_p5 = pnand %p1232_p3, %p57_p4  ;;  %s1508_s28 = int_to_ptr.vmem [resolvable:$true] %s159_s28 }
   0xf   : > { %s1510_s30 = scalar_lea.sflag [#allocation6], %s148_s20  ;;  %s1271_s4 = scalar_lea.hbm %s1502_s26, 32768 }
  0x10   : > { %s1960_s29 = scalar_select %p1504_p5, 1, 0 }
  0x11   : > { %p1272_p6 = scmp.ne.s32.totalorder %s1502_s26, %s1271_s4  ;;  %p1954_p7 = pneg %p1504_p5 }
  0x12   : > { %s1276_s7 = scalar_lea.hbm %s1950_s1, 131072  ;;  %p1277_p10 = scmp.lt.u32.totalorder %s1502_s26, %s1950_s1 }
  0x13   : > { %p1274_p8 = pnand %p1954_p7, %p1272_p6  ;;  %p1278_p11 = scmp.lt.u32.totalorder %s1276_s7, %s1271_s4 }
  0x14   : > { %p1280_p13 = scmp.lt.u32.totalorder %s1271_s4, %s1502_s26 }
  0x15   : > { %p1275_p9 = pneg %p1274_p8  ;;  %p1279_p12 = por %p1278_p11, %p1277_p10 }
  0x17   : > { %p1281_p1 = por %p1280_p13, %p1279_p12 }
  0x19   : > { %p1282_p2 = pnand %p1281_p1, %p1275_p9 }
  0x1b   : > { %1285 = shalt.err (!%p1282_p2)
}
  0x1c   : > { %s1286_s10 = scalar_lea.vmem %s1508_s28, 32768  ;;  %s1431_s11 = smov [#allocation5]  }
  0x1d   : > { %p1287_p3 = scmp.ne.s32.totalorder %s1508_s28, %s1286_s10  ;;  %s1291_s17 = sshll.u32 %s1431_s11, 4  ;;  %s1292_s17 = int_to_ptr.vmem [resolvable:$false] %s1291_s17 }
  0x1e   : > { %s1293_s18 = scalar_lea.vmem %s1292_s17, 65536  ;;  %p1294_p8 = scmp.lt.s32.totalorder %s1508_s28, %s1292_s17 }
  0x1f   : > { %p1289_p4 = pnand %p1287_p3, %p1954_p7  ;;  %p1295_p10 = scmp.lt.s32.totalorder %s1293_s18, %s1286_s10 }
  0x21   : > { %p1290_p6 = pneg %p1289_p4  ;;  %p1296_p11 = por %p1295_p10, %p1294_p8 }
  0x23   : > { %p1297_p12 = pnand %p1296_p11, %p1290_p6 }
  0x25   : > { %1300 = shalt.err (!%p1297_p12)
}
  0x26   : > { %s1432_s20 = smov 1024   ;;  %s1433_s22 = smov 256  }
  0x27   : > { %s1434_s23 = smov 16   ;;  %s1539_s24 = sadd.s32 4294967295, %s1429_s15  }
  0x28   : > { %1223 = dma.hbm_to_vmem [thread:$0]  (!%p1504_p5), %s1502_s26, 32768, %s1508_s28, %s1510_s30, %s1432_s20, %s1433_s22, %s1434_s23  }
  0x29   : > { %s919_s25 = sadd.s32 4294967294, %s1429_s15   ;;  %p61_p9 = scmp.ne.s32.totalorder %s1421_s13, %s1417_s12 }
  0x2a   : > { %p1953_p13 = scmp.eq.s32.totalorder %s1539_s24, 0  ;;  %p111_p1 = scmp.eq.s32.totalorder %s1539_s24, 3 }
  0x2b   : > { %p117_p2 = scmp.eq.s32.totalorder %s919_s25, 3  ;;  %p920_p3 = scmp.ge.s32.totalorder %s1429_s15, 1 }
  0x2c   : > { %p1549_p4 = por %p1953_p13, %p61_p9  ;;  %p1556_p6 = por %p111_p1, %p55_p0 }
  0x2d   : > { %p1560_p8 = por %p117_p2, %p61_p9  ;;  %p124_p10 = scmp.lt.s32.totalorder %s1429_s15, 5 }
  0x2e   : > { %s1961_s27 = scalar_select %p1549_p4, 1, 0 }
  0x2f   : > { %s1962_s26 = scalar_select %p1556_p6, 1, 0 }
  0x30   : > { %s1963_s28 = scalar_select %p1560_p8, 1, 0 }
  0x31   : > { %p1565_p11 = pnand %p920_p3, %p124_p10  ;;  %s1435_s5 = smov [#allocation2]  }
  0x32   : > { %s137_s6 = sshll.u32 %s1435_s5, 4  ;;  %s926_s7 = sshll.u32 %s150_s21, 1  ;;  %s138_s6 = int_to_ptr.vmem [resolvable:$true] %s137_s6 }
  0x33   : > { %s1964_s4 = scalar_select %p1565_p11, 1, 0 }
  0x34   : > { %p1216_p12 = pneg %p1565_p11  ;;  %s940_s8 = sshll.u32 %s1429_s15, 5 }
  0x35   : > { %s173_s9 = scalar_lea.vmem [#allocation7], %s926_s7  ;;  %s1583_s20 = scalar_lea.hbm %s1951_s2, %s940_s8 }
  0x36   : > { %s181_s10 = sshll.u32 %s173_s9, 4  ;;  %p1576_p0 = pnand %p1216_p12, %p1953_p13  ;;  %s1585_s10 = int_to_ptr.vmem [resolvable:$true] %s181_s10 }
  0x37   : > { %s1301_s23 = scalar_lea.hbm %s1949_s0, 1024 }
  0x38   : > { %p1302_p9 = scmp.ne.s32.totalorder %s1949_s0, %s1301_s23  ;;  %p1303_p1 = pneg %p1576_p0 }
  0x39   : > { %p1308_p10 = scmp.lt.u32.totalorder %s1301_s23, %s1949_s0 }
  0x3a   : > { %p1304_p2 = pnand %p1303_p1, %p1302_p9 }
  0x3c   : > { %p1305_p3 = pneg %p1304_p2 }
  0x3e   : > { %p1310_p12 = pnand %p1308_p10, %p1305_p3 }
  0x40   : > { %1313 = shalt.err (!%p1310_p12)
}
  0x41   : > { %s1314_s8 = scalar_lea.vmem %s138_s6, 1024  ;;  %p1322_p6 = scmp.lt.s32.totalorder %s138_s6, %s138_s6 }
  0x42   : > { %p1315_p13 = scmp.ne.s32.totalorder %s138_s6, %s1314_s8  ;;  %p1323_p4 = scmp.lt.s32.totalorder %s1314_s8, %s1314_s8 }
  0x44   : > { %p1317_p7 = pnand %p1315_p13, %p1303_p1  ;;  %p1324_p11 = por %p1323_p4, %p1322_p6 }
  0x46   : > { %p1318_p8 = pneg %p1317_p7 }
  0x48   : > { %p1325_p5 = pnand %p1324_p11, %p1318_p8 }
  0x4a   : > { %1328 = shalt.err (!%p1325_p5)
}
  0x4b   : > { %1219 = dma.hbm_to_vmem [thread:$0]  (!%p1576_p0), %s1949_s0, 1024, %s138_s6, [#allocation3]  }
  0x4c   : > { %s1329_s21 = scalar_lea.hbm %s1583_s20, 32  ;;  %p1966_p13 = scmp.ne.s32.totalorder %s1960_s29, 0 }
  0x4d   : > { %p1330_p9 = scmp.ne.s32.totalorder %s1583_s20, %s1329_s21  ;;  %s1334_s25 = scalar_lea.hbm %s1951_s2, 128 }
  0x4e   : > { %p1967_p7 = pneg %p1966_p13  ;;  %p1335_p5 = scmp.lt.u32.totalorder %s1583_s20, %s1951_s2 }
  0x4f   : > { %p1336_p4 = scmp.lt.u32.totalorder %s1334_s25, %s1329_s21  ;;  %p1338_p8 = scmp.lt.u32.totalorder %s1329_s21, %s1583_s20 }
  0x50   : > { %p1332_p1 = pnand %p1330_p9, %p1967_p7 }
  0x51   : > { %p1337_p6 = por %p1336_p4, %p1335_p5 }
  0x52   : > { %p1333_p2 = pneg %p1332_p1 }
  0x53   : > { %p1339_p11 = por %p1338_p8, %p1337_p6 }
  0x55   : > { %p1340_p3 = pnand %p1339_p11, %p1333_p2 }
  0x57   : > { %1343 = shalt.err (!%p1340_p3)
}
  0x58   : > { %s1344_s6 = scalar_lea.vmem %s1585_s10, 32  ;;  %p1968_p10 = pmov %p1967_p7 }
  0x59   : > { %p1345_p0 = scmp.ne.s32.totalorder %s1585_s10, %s1344_s6  ;;  %s1436_s7 = smov [#allocation7]  }
  0x5a   : > { %s1349_s9 = sshll.u32 %s1436_s7, 4  ;;  %s1350_s9 = int_to_ptr.vmem [resolvable:$false] %s1349_s9 }
  0x5b   : > { %p1347_p12 = pnand %p1345_p0, %p1968_p10  ;;  %s1351_s8 = scalar_lea.vmem %s1350_s9, 64 }
  0x5c   : > { %p1352_p7 = scmp.lt.s32.totalorder %s1585_s10, %s1350_s9  ;;  %p1353_p1 = scmp.lt.s32.totalorder %s1351_s8, %s1344_s6 }
  0x5d   : > { %p1348_p9 = pneg %p1347_p12 }
  0x5e   : > { %p1354_p5 = por %p1353_p1, %p1352_p7 }
  0x60   : > { %p1355_p4 = pnand %p1354_p5, %p1348_p9 }
  0x62   : > { %1358 = shalt.err (!%p1355_p4)
}
  0x63   : > { %1226 = dma.hbm_to_vmem [thread:$0]  (!%p1966_p13), %s1583_s20, 32, %s1585_s10, %s1510_s30  }
  0x64   : > { %p1969_p2 = scmp.ne.s32.totalorder %s1964_s4, 0 }
  0x65   : > { %p1970_p6 = scmp.eq.s32.totalorder (!%p1969_p2), %s1539_s24, 0 }
  0x66   : > { %190 = sbr.rel (%p1969_p2) target bundleno = 478 (0x1de), region = 32 }
  0x6d   : > { %1404 = dma.done.wait (%p1970_p6), [#allocation3], 1024   ;;  %p1971_p8 = pmov %p1970_p6 }
  0x6e   : > { %s196_s17 = sand.u32 1, %s1539_s24   ;;  %s1635_s18 = sand.u32 1, %s1421_s13  }
  0x6f   : > { %1406 = vsyncadd (%p1971_p8), [#allocation3], 4294966272  ;;  %s931_s29 = sshll.u32 %s1635_s18, 11  ;;  %s197_s21 = scalar_lea.sflag [#allocation6], %s196_s17 }
  0x70   : > { %s1638_s22 = scalar_lea.vmem [#allocation5], %s931_s29  ;;  %p1972_p13 = scmp.ne.s32.totalorder %s1961_s27, 0 }
  0x72   : > { %1408 = dma.done.wait (%p1972_p13), %s197_s21, 32800  }
  0x73   : > { %1410 = vsyncadd (%p1972_p13), %s197_s21, 4294934496  ;;  %v249_v0 = vld [vmem:[%s1638_s22 + $0x8] sm:$0xff]  ;;  %v251_v1 = vld [vmem:[%s1638_s22 + $0x18] sm:$0xff]  ;;  %s932_s30 = sshll.u32 %s1635_s18, 1  ;;  %s933_s4 = sshll.u32 %s1635_s18, 4 }
  0x74   : > { %v377_v2 = vld [vmem:[%s1638_s22 + $0x408] sm:$0xff]  ;;  %v942_v3 = vpack.c.bf16 %v251_v1, %v249_v0  ;;  %v379_v4 = vld [vmem:[%s1638_s22 + $0x418] sm:$0xff]  ;;  %v248_v5 = vld [vmem:[%s1638_s22] sm:$0xff]  ;;  %s209_s27 = scalar_lea.vmem [#allocation7], %s932_s30  ;;  %s941_s10 = sshll.u32 %s1539_s24, 8 }
  0x75   : > { %v250_v6 = vld [vmem:[%s1638_s22 + $0x10] sm:$0xff]  ;;  %v1070_v7 = vpack.c.bf16 %v379_v4, %v377_v2  ;;  %v376_v9 = vld [vmem:[%s1638_s22 + $0x400] sm:$0xff]  ;;  %v253_v11 = vld [vmem:[%s1638_s22 + $0x28] sm:$0xff]  ;;  %s236_s20 = scalar_lea.vmem [#allocation8], %s933_s4  ;;  %s1906_s5 = scalar_lea.hbm %s1952_s3, %s941_s10 }
  0x76   : > { %v944_v8 = vpack.c.bf16 %v250_v6, %v248_v5  ;;  %v378_v10 = vld [vmem:[%s1638_s22 + $0x410] sm:$0xff]  ;;  %943 = vmatprep.subr.bf16.mxu1 %v942_v3  ;;  %v255_v13 = vld [vmem:[%s1638_s22 + $0x38] sm:$0xff]  ;;  %v381_v14 = vld [vmem:[%s1638_s22 + $0x428] sm:$0xff]  ;;  %s817_s23 = sshll.u32 %s236_s20, 4  ;;  %s803_s6 = scalar_lea.sflag [#allocation4], %s1635_s18  ;;  %s1908_s23 = int_to_ptr.vmem [resolvable:$true] %s817_s23 }
  0x77   : > { %v1072_v12 = vpack.c.bf16 %v378_v10, %v376_v9  ;;  %v383_v15 = vld [vmem:[%s1638_s22 + $0x438] sm:$0xff]  ;;  %1071 = vmatprep.subr.bf16.mxu0 %v1070_v7  ;;  %v946_v16 = vpack.c.bf16 %v255_v13, %v253_v11  ;;  %v252_v18 = vld [vmem:[%s1638_s22 + $0x20] sm:$0xff]  ;;  %v254_v19 = vld [vmem:[%s1638_s22 + $0x30] sm:$0xff]  ;;  %s1359_s24 = scalar_lea.vmem %s1908_s23, 256  ;;  %p1973_p3 = scmp.ne.s32.totalorder %s1962_s26, 0 }
  0x78   : > { %945 = vmatpush1.bf16.msra.mxu1 %v944_v8  ;;  %v1074_v17 = vpack.c.bf16 %v383_v15, %v381_v14  ;;  %v380_v20 = vld [vmem:[%s1638_s22 + $0x420] sm:$0xff]  ;;  %v948_v21 = vpack.c.bf16 %v254_v19, %v252_v18  ;;  %v382_v22 = vld [vmem:[%s1638_s22 + $0x430] sm:$0xff]  ;;  %v257_v23 = vld [vmem:[%s1638_s22 + $0x48] sm:$0xff]  ;;  %p1360_p11 = scmp.ne.s32.totalorder %s1908_s23, %s1359_s24  ;;  %s1437_s7 = smov [#allocation8]  }
  0x79   : > { %1073 = vmatpush1.bf16.msra.mxu0 %v1072_v12  ;;  %v259_v24 = vld [vmem:[%s1638_s22 + $0x58] sm:$0xff]  ;;  %947 = vmatprep.subr.bf16.mxu1 %v946_v16  ;;  %v1076_v25 = vpack.c.bf16 %v382_v22, %v380_v20  ;;  %v385_v27 = vld [vmem:[%s1638_s22 + $0x448] sm:$0xff]  ;;  %v256_v29 = vld [vmem:[%s1638_s22 + $0x40] sm:$0xff]  ;;  %s1363_s9 = sshll.u32 %s1437_s7, 4  ;;  %s1364_s9 = int_to_ptr.vmem [resolvable:$false] %s1363_s9 }
  0x7a   : > { %1075 = vmatprep.subr.bf16.mxu0 %v1074_v17  ;;  %v950_v26 = vpack.c.bf16 %v259_v24, %v257_v23  ;;  %v387_v28 = vld [vmem:[%s1638_s22 + $0x458] sm:$0xff]  ;;  %v258_v31 = vld [vmem:[%s1638_s22 + $0x50] sm:$0xff]  ;;  %v384_v32 = vld [vmem:[%s1638_s22 + $0x440] sm:$0xff]  ;;  %p1361_p0 = pnand %p1360_p11, %p1973_p3  ;;  %s1365_s8 = scalar_lea.vmem %s1364_s9, 512 }
  0x7b   : > { %v1078_v30 = vpack.c.bf16 %v387_v28, %v385_v27  ;;  %v386_v33 = vld [vmem:[%s1638_s22 + $0x450] sm:$0xff]  ;;  %v952_v34 = vpack.c.bf16 %v258_v31, %v256_v29  ;;  %v261_v35 = vld [vmem:[%s1638_s22 + $0x68] sm:$0xff]  ;;  %v263_v36 = vld [vmem:[%s1638_s22 + $0x78] sm:$0xff]  ;;  %p1366_p12 = scmp.lt.s32.totalorder %s1908_s23, %s1364_s9  ;;  %p1367_p9 = scmp.lt.s32.totalorder %s1365_s8, %s1359_s24 }
  0x7c   : > { %949 = vmatpush1.bf16.msra.mxu1 %v948_v21  ;;  %v389_v37 = vld [vmem:[%s1638_s22 + $0x468] sm:$0xff]  ;;  %v1080_v38 = vpack.c.bf16 %v386_v33, %v384_v32  ;;  %v954_v39 = vpack.c.bf16 %v263_v36, %v261_v35  ;;  %v391_v40 = vld [vmem:[%s1638_s22 + $0x478] sm:$0xff]  ;;  %v260_v41 = vld [vmem:[%s1638_s22 + $0x60] sm:$0xff]  ;;  %p1362_p10 = pneg %p1361_p0 }
  0x7d   : > { %1077 = vmatpush1.bf16.msra.mxu0 %v1076_v25  ;;  %951 = vmatprep.subr.bf16.mxu1 %v950_v26  ;;  %v262_v42 = vld [vmem:[%s1638_s22 + $0x70] sm:$0xff]  ;;  %v1082_v43 = vpack.c.bf16 %v391_v40, %v389_v37  ;;  %v388_v44 = vld [vmem:[%s1638_s22 + $0x460] sm:$0xff]  ;;  %v265_v46 = vld [vmem:[%s1638_s22 + $0x88] sm:$0xff]  ;;  %p1368_p7 = por %p1367_p9, %p1366_p12 }
  0x7e   : > { %1079 = vmatprep.subr.bf16.mxu0 %v1078_v30  ;;  %v390_v45 = vld [vmem:[%s1638_s22 + $0x470] sm:$0xff]  ;;  %v267_v47 = vld [vmem:[%s1638_s22 + $0x98] sm:$0xff]  ;;  %v393_v48 = vld [vmem:[%s1638_s22 + $0x488] sm:$0xff]  ;;  %v956_v50 = vpack.c.bf16 %v262_v42, %v260_v41 }
  0x7f   : > { %v395_v49 = vld [vmem:[%s1638_s22 + $0x498] sm:$0xff]  ;;  %v1084_v51 = vpack.c.bf16 %v390_v45, %v388_v44  ;;  %v958_v52 = vpack.c.bf16 %v267_v47, %v265_v46  ;;  %v264_v53 = vld [vmem:[%s1638_s22 + $0x80] sm:$0xff]  ;;  %v266_v54 = vld [vmem:[%s1638_s22 + $0x90] sm:$0xff]  ;;  %p1369_p1 = pnand %p1368_p7, %p1362_p10 }
  0x80   : > { %953 = vmatpush1.bf16.msra.mxu1 %v952_v34  ;;  %v392_v55 = vld [vmem:[%s1638_s22 + $0x480] sm:$0xff]  ;;  %v1086_v56 = vpack.c.bf16 %v395_v49, %v393_v48  ;;  %v394_v57 = vld [vmem:[%s1638_s22 + $0x490] sm:$0xff]  ;;  %v269_v58 = vld [vmem:[%s1638_s22 + $0xa8] sm:$0xff]  ;;  %v960_v62 = vpack.c.bf16 %v266_v54, %v264_v53 }
  0x81   : > { %1081 = vmatpush1.bf16.msra.mxu0 %v1080_v38  ;;  %955 = vmatprep.subr.bf16.mxu1 %v954_v39  ;;  %v271_v59 = vld [vmem:[%s1638_s22 + $0xb8] sm:$0xff]  ;;  %v397_v60 = vld [vmem:[%s1638_s22 + $0x4a8] sm:$0xff]  ;;  %v1088_v63 = vpack.c.bf16 %v394_v57, %v392_v55  ;;  %v268_v1 = vld [vmem:[%s1638_s22 + $0xa0] sm:$0xff] }
  0x82   : > { %1083 = vmatprep.subr.bf16.mxu0 %v1082_v43  ;;  %v399_v61 = vld [vmem:[%s1638_s22 + $0x4b8] sm:$0xff]  ;;  %v962_v0 = vpack.c.bf16 %v271_v59, %v269_v58  ;;  %v270_v2 = vld [vmem:[%s1638_s22 + $0xb0] sm:$0xff]  ;;  %v396_v3 = vld [vmem:[%s1638_s22 + $0x4a0] sm:$0xff] }
  0x83   : > { %v1090_v4 = vpack.c.bf16 %v399_v61, %v397_v60  ;;  %v398_v5 = vld [vmem:[%s1638_s22 + $0x4b0] sm:$0xff]  ;;  %v273_v6 = vld [vmem:[%s1638_s22 + $0xc8] sm:$0xff]  ;;  %v275_v7 = vld [vmem:[%s1638_s22 + $0xd8] sm:$0xff]  ;;  %v964_v10 = vpack.c.bf16 %v270_v2, %v268_v1 }
  0x84   : > { %957 = vmatpush1.bf16.msra.mxu1 %v956_v50  ;;  %v401_v8 = vld [vmem:[%s1638_s22 + $0x4c8] sm:$0xff]  ;;  %v403_v9 = vld [vmem:[%s1638_s22 + $0x4d8] sm:$0xff]  ;;  %v1092_v11 = vpack.c.bf16 %v398_v5, %v396_v3  ;;  %v966_v12 = vpack.c.bf16 %v275_v7, %v273_v6  ;;  %v272_v13 = vld [vmem:[%s1638_s22 + $0xc0] sm:$0xff] }
  0x85   : > { %1085 = vmatpush1.bf16.msra.mxu0 %v1084_v51  ;;  %959 = vmatprep.subr.bf16.mxu1 %v958_v52  ;;  %v274_v14 = vld [vmem:[%s1638_s22 + $0xd0] sm:$0xff]  ;;  %v400_v15 = vld [vmem:[%s1638_s22 + $0x4c0] sm:$0xff]  ;;  %v1094_v16 = vpack.c.bf16 %v403_v9, %v401_v8  ;;  %v277_v18 = vld [vmem:[%s1638_s22 + $0xe8] sm:$0xff] }
  0x86   : > { %1087 = vmatprep.subr.bf16.mxu0 %v1086_v56  ;;  %v402_v17 = vld [vmem:[%s1638_s22 + $0x4d0] sm:$0xff]  ;;  %v279_v19 = vld [vmem:[%s1638_s22 + $0xf8] sm:$0xff]  ;;  %v405_v20 = vld [vmem:[%s1638_s22 + $0x4e8] sm:$0xff]  ;;  %v968_v22 = vpack.c.bf16 %v274_v14, %v272_v13 }
  0x87   : > { %v407_v21 = vld [vmem:[%s1638_s22 + $0x4f8] sm:$0xff]  ;;  %v1096_v23 = vpack.c.bf16 %v402_v17, %v400_v15  ;;  %v970_v24 = vpack.c.bf16 %v279_v19, %v277_v18  ;;  %v276_v25 = vld [vmem:[%s1638_s22 + $0xe0] sm:$0xff]  ;;  %v278_v26 = vld [vmem:[%s1638_s22 + $0xf0] sm:$0xff] }
  0x88   : > { %961 = vmatpush1.bf16.msra.mxu1 %v960_v62  ;;  %v404_v27 = vld [vmem:[%s1638_s22 + $0x4e0] sm:$0xff]  ;;  %v1098_v28 = vpack.c.bf16 %v407_v21, %v405_v20  ;;  %v406_v29 = vld [vmem:[%s1638_s22 + $0x4f0] sm:$0xff]  ;;  %v281_v30 = vld [vmem:[%s1638_s22 + $0x108] sm:$0xff]  ;;  %v972_v34 = vpack.c.bf16 %v278_v26, %v276_v25 }
  0x89   : > { %1089 = vmatpush1.bf16.msra.mxu0 %v1088_v63  ;;  %963 = vmatprep.subr.bf16.mxu1 %v962_v0  ;;  %v283_v31 = vld [vmem:[%s1638_s22 + $0x118] sm:$0xff]  ;;  %v409_v32 = vld [vmem:[%s1638_s22 + $0x508] sm:$0xff]  ;;  %v1100_v35 = vpack.c.bf16 %v406_v29, %v404_v27  ;;  %v280_v37 = vld [vmem:[%s1638_s22 + $0x100] sm:$0xff] }
  0x8a   : > { %1091 = vmatprep.subr.bf16.mxu0 %v1090_v4  ;;  %v411_v33 = vld [vmem:[%s1638_s22 + $0x518] sm:$0xff]  ;;  %v974_v36 = vpack.c.bf16 %v283_v31, %v281_v30  ;;  %v282_v38 = vld [vmem:[%s1638_s22 + $0x110] sm:$0xff]  ;;  %v408_v39 = vld [vmem:[%s1638_s22 + $0x500] sm:$0xff] }
  0x8b   : > { %v1102_v40 = vpack.c.bf16 %v411_v33, %v409_v32  ;;  %v410_v41 = vld [vmem:[%s1638_s22 + $0x510] sm:$0xff]  ;;  %v285_v42 = vld [vmem:[%s1638_s22 + $0x128] sm:$0xff]  ;;  %v287_v43 = vld [vmem:[%s1638_s22 + $0x138] sm:$0xff]  ;;  %v976_v46 = vpack.c.bf16 %v282_v38, %v280_v37 }
  0x8c   : > { %965 = vmatpush1.bf16.msra.mxu1 %v964_v10  ;;  %v413_v44 = vld [vmem:[%s1638_s22 + $0x528] sm:$0xff]  ;;  %v415_v45 = vld [vmem:[%s1638_s22 + $0x538] sm:$0xff]  ;;  %v1104_v47 = vpack.c.bf16 %v410_v41, %v408_v39  ;;  %v978_v48 = vpack.c.bf16 %v287_v43, %v285_v42  ;;  %v284_v49 = vld [vmem:[%s1638_s22 + $0x120] sm:$0xff] }
  0x8d   : > { %1093 = vmatpush1.bf16.msra.mxu0 %v1092_v11  ;;  %967 = vmatprep.subr.bf16.mxu1 %v966_v12  ;;  %v286_v50 = vld [vmem:[%s1638_s22 + $0x130] sm:$0xff]  ;;  %v412_v51 = vld [vmem:[%s1638_s22 + $0x520] sm:$0xff]  ;;  %v1106_v52 = vpack.c.bf16 %v415_v45, %v413_v44  ;;  %v289_v54 = vld [vmem:[%s1638_s22 + $0x148] sm:$0xff] }
  0x8e   : > { %1095 = vmatprep.subr.bf16.mxu0 %v1094_v16  ;;  %v414_v53 = vld [vmem:[%s1638_s22 + $0x530] sm:$0xff]  ;;  %v291_v55 = vld [vmem:[%s1638_s22 + $0x158] sm:$0xff]  ;;  %v417_v56 = vld [vmem:[%s1638_s22 + $0x548] sm:$0xff]  ;;  %v980_v58 = vpack.c.bf16 %v286_v50, %v284_v49 }
  0x8f   : > { %v419_v57 = vld [vmem:[%s1638_s22 + $0x558] sm:$0xff]  ;;  %v1108_v59 = vpack.c.bf16 %v414_v53, %v412_v51  ;;  %v982_v60 = vpack.c.bf16 %v291_v55, %v289_v54  ;;  %v288_v61 = vld [vmem:[%s1638_s22 + $0x140] sm:$0xff]  ;;  %v290_v62 = vld [vmem:[%s1638_s22 + $0x150] sm:$0xff] }
  0x90   : > { %969 = vmatpush1.bf16.msra.mxu1 %v968_v22  ;;  %v416_v63 = vld [vmem:[%s1638_s22 + $0x540] sm:$0xff]  ;;  %v1110_v0 = vpack.c.bf16 %v419_v57, %v417_v56  ;;  %v418_v1 = vld [vmem:[%s1638_s22 + $0x550] sm:$0xff]  ;;  %v293_v2 = vld [vmem:[%s1638_s22 + $0x168] sm:$0xff]  ;;  %v984_v6 = vpack.c.bf16 %v290_v62, %v288_v61 }
  0x91   : > { %1097 = vmatpush1.bf16.msra.mxu0 %v1096_v23  ;;  %971 = vmatprep.subr.bf16.mxu1 %v970_v24  ;;  %v295_v3 = vld [vmem:[%s1638_s22 + $0x178] sm:$0xff]  ;;  %v421_v4 = vld [vmem:[%s1638_s22 + $0x568] sm:$0xff]  ;;  %v292_v7 = vld [vmem:[%s1638_s22 + $0x160] sm:$0xff]  ;;  %v1112_v8 = vpack.c.bf16 %v418_v1, %v416_v63 }
  0x92   : > { %1099 = vmatprep.subr.bf16.mxu0 %v1098_v28  ;;  %v423_v5 = vld [vmem:[%s1638_s22 + $0x578] sm:$0xff]  ;;  %v986_v9 = vpack.c.bf16 %v295_v3, %v293_v2  ;;  %v294_v10 = vld [vmem:[%s1638_s22 + $0x170] sm:$0xff]  ;;  %v420_v11 = vld [vmem:[%s1638_s22 + $0x560] sm:$0xff] }
  0x93   : > { %v422_v12 = vld [vmem:[%s1638_s22 + $0x570] sm:$0xff]  ;;  %v1114_v13 = vpack.c.bf16 %v423_v5, %v421_v4  ;;  %v297_v14 = vld [vmem:[%s1638_s22 + $0x188] sm:$0xff]  ;;  %v299_v15 = vld [vmem:[%s1638_s22 + $0x198] sm:$0xff]  ;;  %v988_v20 = vpack.c.bf16 %v294_v10, %v292_v7 }
  0x94   : > { %973 = vmatpush1.bf16.msra.mxu1 %v972_v34  ;;  %v241_v16 = vld [vmem:[#allocation2 + $0x8] sm:$0xff]  ;;  %v427_v18 = vld [vmem:[%s1638_s22 + $0x598] sm:$0xff]  ;;  %v1116_v21 = vpack.c.bf16 %v422_v12, %v420_v11  ;;  %v990_v22 = vpack.c.bf16 %v299_v15, %v297_v14  ;;  %v296_v23 = vld [vmem:[%s1638_s22 + $0x180] sm:$0xff] }
  0x95   : > { %1101 = vmatpush1.bf16.msra.mxu0 %v1100_v35  ;;  %975 = vmatprep.subr.bf16.mxu1 %v974_v36  ;;  %v425_v17 = vld [vmem:[%s1638_s22 + $0x588] sm:$0xff]  ;;  %v298_v24 = vld [vmem:[%s1638_s22 + $0x190] sm:$0xff]  ;;  %v424_v25 = vld [vmem:[%s1638_s22 + $0x580] sm:$0xff] }
  0x96   : > { %1103 = vmatprep.subr.bf16.mxu0 %v1102_v40  ;;  %580 = vmatprep.mubr.f32.mxu1 %v241_v16  ;;  %v245_v19 = vld [vmem:[#allocation2 + $0x28] sm:$0xff]  ;;  %v1118_v26 = vpack.c.bf16 %v427_v18, %v425_v17  ;;  %v426_v27 = vld [vmem:[%s1638_s22 + $0x590] sm:$0xff]  ;;  %v303_v29 = vld [vmem:[%s1638_s22 + $0x1b8] sm:$0xff]  ;;  %v992_v32 = vpack.c.bf16 %v298_v24, %v296_v23 }
  0x97   : > { %722 = vmatprep.mubr.f32.mxu0 %v245_v19  ;;  %v301_v28 = vld [vmem:[%s1638_s22 + $0x1a8] sm:$0xff]  ;;  %v431_v31 = vld [vmem:[%s1638_s22 + $0x5b8] sm:$0xff]  ;;  %v1120_v33 = vpack.c.bf16 %v426_v27, %v424_v25  ;;  %v300_v35 = vld [vmem:[%s1638_s22 + $0x1a0] sm:$0xff] }
  0x98   : > { %977 = vmatpush1.bf16.msra.mxu1 %v976_v46  ;;  %v429_v30 = vld [vmem:[%s1638_s22 + $0x5a8] sm:$0xff]  ;;  %v994_v34 = vpack.c.bf16 %v303_v29, %v301_v28  ;;  %v302_v36 = vld [vmem:[%s1638_s22 + $0x1b0] sm:$0xff]  ;;  %v428_v37 = vld [vmem:[%s1638_s22 + $0x5a0] sm:$0xff] }
  0x99   : > { %1105 = vmatpush1.bf16.msra.mxu0 %v1104_v47  ;;  %979 = vmatprep.subr.bf16.mxu1 %v978_v48  ;;  %v1122_v38 = vpack.c.bf16 %v431_v31, %v429_v30  ;;  %v430_v39 = vld [vmem:[%s1638_s22 + $0x5b0] sm:$0xff]  ;;  %v305_v40 = vld [vmem:[%s1638_s22 + $0x1c8] sm:$0xff]  ;;  %v307_v41 = vld [vmem:[%s1638_s22 + $0x1d8] sm:$0xff]  ;;  %v996_v44 = vpack.c.bf16 %v302_v36, %v300_v35 }
  0x9a   : > { %1107 = vmatprep.subr.bf16.mxu0 %v1106_v52  ;;  %v433_v42 = vld [vmem:[%s1638_s22 + $0x5c8] sm:$0xff]  ;;  %v435_v43 = vld [vmem:[%s1638_s22 + $0x5d8] sm:$0xff]  ;;  %v1124_v45 = vpack.c.bf16 %v430_v39, %v428_v37  ;;  %v998_v46 = vpack.c.bf16 %v307_v41, %v305_v40  ;;  %v304_v47 = vld [vmem:[%s1638_s22 + $0x1c0] sm:$0xff] }
  0x9b   : > { %v306_v48 = vld [vmem:[%s1638_s22 + $0x1d0] sm:$0xff]  ;;  %v432_v49 = vld [vmem:[%s1638_s22 + $0x5c0] sm:$0xff]  ;;  %v1126_v50 = vpack.c.bf16 %v435_v43, %v433_v42  ;;  %v309_v52 = vld [vmem:[%s1638_s22 + $0x1e8] sm:$0xff] }
  0x9c   : > { %981 = vmatpush1.bf16.msra.mxu1 %v980_v58  ;;  %v434_v51 = vld [vmem:[%s1638_s22 + $0x5d0] sm:$0xff]  ;;  %v311_v53 = vld [vmem:[%s1638_s22 + $0x1f8] sm:$0xff]  ;;  %v437_v54 = vld [vmem:[%s1638_s22 + $0x5e8] sm:$0xff]  ;;  %v1000_v56 = vpack.c.bf16 %v306_v48, %v304_v47 }
  0x9d   : > { %1109 = vmatpush1.bf16.msra.mxu0 %v1108_v59  ;;  %983 = vmatprep.subr.bf16.mxu1 %v982_v60  ;;  %v439_v55 = vld [vmem:[%s1638_s22 + $0x5f8] sm:$0xff]  ;;  %v1128_v57 = vpack.c.bf16 %v434_v51, %v432_v49  ;;  %v1002_v58 = vpack.c.bf16 %v311_v53, %v309_v52  ;;  %v308_v59 = vld [vmem:[%s1638_s22 + $0x1e0] sm:$0xff]  ;;  %v310_v60 = vld [vmem:[%s1638_s22 + $0x1f0] sm:$0xff] }
  0x9e   : > { %1111 = vmatprep.subr.bf16.mxu0 %v1110_v0  ;;  %v436_v61 = vld [vmem:[%s1638_s22 + $0x5e0] sm:$0xff]  ;;  %v1130_v62 = vpack.c.bf16 %v439_v55, %v437_v54  ;;  %v438_v63 = vld [vmem:[%s1638_s22 + $0x5f0] sm:$0xff]  ;;  %v313_v0 = vld [vmem:[%s1638_s22 + $0x208] sm:$0xff]  ;;  %v1004_v4 = vpack.c.bf16 %v310_v60, %v308_v59 }
  0x9f   : > { %v315_v1 = vld [vmem:[%s1638_s22 + $0x218] sm:$0xff]  ;;  %v441_v2 = vld [vmem:[%s1638_s22 + $0x608] sm:$0xff]  ;;  %v1132_v5 = vpack.c.bf16 %v438_v63, %v436_v61  ;;  %v312_v7 = vld [vmem:[%s1638_s22 + $0x200] sm:$0xff] }
  0xa0   : > { %985 = vmatpush1.bf16.msra.mxu1 %v984_v6  ;;  %v443_v3 = vld [vmem:[%s1638_s22 + $0x618] sm:$0xff]  ;;  %v1006_v6 = vpack.c.bf16 %v315_v1, %v313_v0  ;;  %v442_v11 = vld [vmem:[%s1638_s22 + $0x610] sm:$0xff]  ;;  %v317_v12 = vld [vmem:[%s1638_s22 + $0x228] sm:$0xff] }
  0xa1   : > { %1113 = vmatpush1.bf16.msra.mxu0 %v1112_v8  ;;  %987 = vmatprep.subr.bf16.mxu1 %v986_v9  ;;  %v314_v8 = vld [vmem:[%s1638_s22 + $0x210] sm:$0xff]  ;;  %v440_v9 = vld [vmem:[%s1638_s22 + $0x600] sm:$0xff]  ;;  %v1134_v10 = vpack.c.bf16 %v443_v3, %v441_v2  ;;  %v445_v14 = vld [vmem:[%s1638_s22 + $0x628] sm:$0xff] }
  0xa2   : > { %1115 = vmatprep.subr.bf16.mxu0 %v1114_v13  ;;  %v319_v13 = vld [vmem:[%s1638_s22 + $0x238] sm:$0xff]  ;;  %v240_v16 = vld [vmem:[#allocation2] sm:$0xff]  ;;  %v1008_v17 = vpack.c.bf16 %v314_v8, %v312_v7  ;;  %v1136_v19 = vpack.c.bf16 %v442_v11, %v440_v9  ;;  %v446_v25 = vld [vmem:[%s1638_s22 + $0x630] sm:$0xff] }
  0xa3   : > { %v447_v15 = vld [vmem:[%s1638_s22 + $0x638] sm:$0xff]  ;;  %v244_v18 = vld [vmem:[#allocation2 + $0x20] sm:$0xff]  ;;  %v449_v28 = vld [vmem:[%s1638_s22 + $0x648] sm:$0xff] }
  0xa4   : > { %989 = vmatpush1.bf16.msra.mxu1 %v988_v20  ;;  %v1010_v20 = vpack.c.bf16 %v319_v13, %v317_v12  ;;  %v444_v23 = vld [vmem:[%s1638_s22 + $0x620] sm:$0xff]  ;;  %v1138_v24 = vpack.c.bf16 %v447_v15, %v445_v14  ;;  %v323_v27 = vld [vmem:[%s1638_s22 + $0x258] sm:$0xff]  ;;  %v450_v37 = vld [vmem:[%s1638_s22 + $0x650] sm:$0xff] }
  0xa5   : > { %1117 = vmatpush1.bf16.msra.mxu0 %v1116_v21  ;;  %991 = vmatprep.subr.bf16.mxu1 %v990_v22  ;;  %v316_v21 = vld [vmem:[%s1638_s22 + $0x220] sm:$0xff]  ;;  %v318_v22 = vld [vmem:[%s1638_s22 + $0x230] sm:$0xff]  ;;  %v451_v29 = vld [vmem:[%s1638_s22 + $0x658] sm:$0xff]  ;;  %v1140_v31 = vpack.c.bf16 %v446_v25, %v444_v23 }
  0xa6   : > { %1119 = vmatprep.subr.bf16.mxu0 %v1118_v26  ;;  %v321_v26 = vld [vmem:[%s1638_s22 + $0x248] sm:$0xff]  ;;  %v1012_v30 = vpack.c.bf16 %v318_v22, %v316_v21  ;;  %v448_v35 = vld [vmem:[%s1638_s22 + $0x640] sm:$0xff]  ;;  %v1142_v36 = vpack.c.bf16 %v451_v29, %v449_v28  ;;  %v327_v39 = vld [vmem:[%s1638_s22 + $0x278] sm:$0xff] }
  0xa7   : > { %v453_v40 = vld [vmem:[%s1638_s22 + $0x668] sm:$0xff]  ;;  %v455_v41 = vld [vmem:[%s1638_s22 + $0x678] sm:$0xff]  ;;  %v1144_v43 = vpack.c.bf16 %v450_v37, %v448_v35  ;;  %v452_v47 = vld [vmem:[%s1638_s22 + $0x660] sm:$0xff] }
  0xa8   : > { %993 = vmatpush1.bf16.msra.mxu1 %v992_v32  ;;  %v1014_v32 = vpack.c.bf16 %v323_v27, %v321_v26  ;;  %v1146_v48 = vpack.c.bf16 %v455_v41, %v453_v40  ;;  %v454_v49 = vld [vmem:[%s1638_s22 + $0x670] sm:$0xff]  ;;  %v331_v51 = vld [vmem:[%s1638_s22 + $0x298] sm:$0xff]  ;;  %v457_v52 = vld [vmem:[%s1638_s22 + $0x688] sm:$0xff] }
  0xa9   : > { %1121 = vmatpush1.bf16.msra.mxu0 %v1120_v33  ;;  %995 = vmatprep.subr.bf16.mxu1 %v994_v34  ;;  %v320_v33 = vld [vmem:[%s1638_s22 + $0x240] sm:$0xff]  ;;  %v322_v34 = vld [vmem:[%s1638_s22 + $0x250] sm:$0xff]  ;;  %v459_v53 = vld [vmem:[%s1638_s22 + $0x698] sm:$0xff]  ;;  %v1148_v55 = vpack.c.bf16 %v454_v49, %v452_v47 }
  0xaa   : > { %1123 = vmatprep.subr.bf16.mxu0 %v1122_v38  ;;  %v325_v38 = vld [vmem:[%s1638_s22 + $0x268] sm:$0xff]  ;;  %v1016_v42 = vpack.c.bf16 %v322_v34, %v320_v33  ;;  %v456_v59 = vld [vmem:[%s1638_s22 + $0x680] sm:$0xff]  ;;  %v1150_v60 = vpack.c.bf16 %v459_v53, %v457_v52  ;;  %v458_v61 = vld [vmem:[%s1638_s22 + $0x690] sm:$0xff] }
  0xab   : > { %v335_v63 = vld [vmem:[%s1638_s22 + $0x2b8] sm:$0xff]  ;;  %v461_v0 = vld [vmem:[%s1638_s22 + $0x6a8] sm:$0xff]  ;;  %v1152_v3 = vpack.c.bf16 %v458_v61, %v456_v59  ;;  %v460_v7 = vld [vmem:[%s1638_s22 + $0x6a0] sm:$0xff] }
  0xac   : > { %997 = vmatpush1.bf16.msra.mxu1 %v996_v44  ;;  %v1018_v44 = vpack.c.bf16 %v327_v39, %v325_v38  ;;  %v463_v1 = vld [vmem:[%s1638_s22 + $0x6b8] sm:$0xff]  ;;  %v462_v9 = vld [vmem:[%s1638_s22 + $0x6b0] sm:$0xff]  ;;  %v465_v12 = vld [vmem:[%s1638_s22 + $0x6c8] sm:$0xff] }
  0xad   : > { %1125 = vmatpush1.bf16.msra.mxu0 %v1124_v45  ;;  %999 = vmatprep.subr.bf16.mxu1 %v998_v46  ;;  %v324_v45 = vld [vmem:[%s1638_s22 + $0x260] sm:$0xff]  ;;  %v326_v46 = vld [vmem:[%s1638_s22 + $0x270] sm:$0xff]  ;;  %v1154_v8 = vpack.c.bf16 %v463_v1, %v461_v0  ;;  %v339_v11 = vld [vmem:[%s1638_s22 + $0x2d8] sm:$0xff] }
  0xae   : > { %1127 = vmatprep.subr.bf16.mxu0 %v1126_v50  ;;  %v329_v50 = vld [vmem:[%s1638_s22 + $0x288] sm:$0xff]  ;;  %v1020_v54 = vpack.c.bf16 %v326_v46, %v324_v45  ;;  %v467_v13 = vld [vmem:[%s1638_s22 + $0x6d8] sm:$0xff]  ;;  %v336_v15 = vld [vmem:[%s1638_s22 + $0x2c0] sm:$0xff] }
  0xaf   : > { %v1158_v21 = vpack.c.bf16 %v467_v13, %v465_v12  ;;  %v341_v22 = vld [vmem:[%s1638_s22 + $0x2e8] sm:$0xff]  ;;  %v343_v23 = vld [vmem:[%s1638_s22 + $0x2f8] sm:$0xff]  ;;  %v468_v33 = vld [vmem:[%s1638_s22 + $0x6e0] sm:$0xff] }
  0xb0   : > { %1001 = vmatpush1.bf16.msra.mxu1 %v1000_v56  ;;  %v1022_v56 = vpack.c.bf16 %v331_v51, %v329_v50  ;;  %v469_v25 = vld [vmem:[%s1638_s22 + $0x6e8] sm:$0xff]  ;;  %v471_v26 = vld [vmem:[%s1638_s22 + $0x6f8] sm:$0xff]  ;;  %v470_v35 = vld [vmem:[%s1638_s22 + $0x6f0] sm:$0xff] }
  0xb1   : > { %1129 = vmatpush1.bf16.msra.mxu0 %v1128_v57  ;;  %1003 = vmatprep.subr.bf16.mxu1 %v1002_v58  ;;  %v328_v57 = vld [vmem:[%s1638_s22 + $0x280] sm:$0xff]  ;;  %v330_v58 = vld [vmem:[%s1638_s22 + $0x290] sm:$0xff]  ;;  %v247_v27 = vld [vmem:[#allocation2 + $0x38] sm:$0xff]  ;;  %v1162_v34 = vpack.c.bf16 %v471_v26, %v469_v25  ;;  %v1164_v41 = vpack.c.bf16 %v470_v35, %v468_v33 }
  0xb2   : > { %1131 = vmatprep.subr.bf16.mxu0 %v1130_v62  ;;  %v333_v62 = vld [vmem:[%s1638_s22 + $0x2a8] sm:$0xff]  ;;  %v1024_v2 = vpack.c.bf16 %v330_v58, %v328_v57  ;;  %v347_v37 = vld [vmem:[%s1638_s22 + $0x318] sm:$0xff]  ;;  %v472_v45 = vld [vmem:[%s1638_s22 + $0x700] sm:$0xff] }
  0xb3   : > { %v473_v38 = vld [vmem:[%s1638_s22 + $0x708] sm:$0xff]  ;;  %v475_v39 = vld [vmem:[%s1638_s22 + $0x718] sm:$0xff]  ;;  %v474_v47 = vld [vmem:[%s1638_s22 + $0x710] sm:$0xff] }
  0xb4   : > { %1005 = vmatpush1.bf16.msra.mxu1 %v1004_v4  ;;  %v1026_v4 = vpack.c.bf16 %v335_v63, %v333_v62  ;;  %v1166_v46 = vpack.c.bf16 %v475_v39, %v473_v38  ;;  %v351_v49 = vld [vmem:[%s1638_s22 + $0x338] sm:$0xff]  ;;  %v477_v50 = vld [vmem:[%s1638_s22 + $0x728] sm:$0xff]  ;;  %v1168_v53 = vpack.c.bf16 %v474_v47, %v472_v45  ;;  %v476_v57 = vld [vmem:[%s1638_s22 + $0x720] sm:$0xff] }
  0xb5   : > { %1133 = vmatpush1.bf16.msra.mxu0 %v1132_v5  ;;  %1007 = vmatprep.subr.bf16.mxu1 %v1006_v6  ;;  %v332_v5 = vld [vmem:[%s1638_s22 + $0x2a0] sm:$0xff]  ;;  %v334_v6 = vld [vmem:[%s1638_s22 + $0x2b0] sm:$0xff]  ;;  %v479_v51 = vld [vmem:[%s1638_s22 + $0x738] sm:$0xff] }
  0xb6   : > { %1135 = vmatprep.subr.bf16.mxu0 %v1134_v10  ;;  %v337_v10 = vld [vmem:[%s1638_s22 + $0x2c8] sm:$0xff]  ;;  %v1028_v14 = vpack.c.bf16 %v334_v6, %v332_v5  ;;  %v1170_v58 = vpack.c.bf16 %v479_v51, %v477_v50  ;;  %v478_v59 = vld [vmem:[%s1638_s22 + $0x730] sm:$0xff]  ;;  %v355_v61 = vld [vmem:[%s1638_s22 + $0x358] sm:$0xff] }
  0xb7   : > { %581 = vmatmul.mubr.f32.vlgmr.msra.gmra.mrb[0].mxu1 %v240_v16  ;;  %v1156_v16 = vpack.c.bf16 %v462_v9, %v460_v7  ;;  %v481_v62 = vld [vmem:[%s1638_s22 + $0x748] sm:$0xff]  ;;  %v483_v63 = vld [vmem:[%s1638_s22 + $0x758] sm:$0xff]  ;;  %v1172_v1 = vpack.c.bf16 %v478_v59, %v476_v57  ;;  %v480_v5 = vld [vmem:[%s1638_s22 + $0x740] sm:$0xff] }
  0xb8   : > { %1009 = vmatpush1.bf16.msra.mxu1 %v1008_v17  ;;  %723 = vmatmul.mubr.f32.vlgmr.msra.gmra.mrb[0].mxu0 %v244_v18  ;;  %v1030_v17 = vpack.c.bf16 %v339_v11, %v337_v10  ;;  %v338_v18 = vld [vmem:[%s1638_s22 + $0x2d0] sm:$0xff]  ;;  %v1174_v6 = vpack.c.bf16 %v483_v63, %v481_v62  ;;  %v359_v9 = vld [vmem:[%s1638_s22 + $0x378] sm:$0xff]  ;;  %v485_v10 = vld [vmem:[%s1638_s22 + $0x768] sm:$0xff] }
  0xb9   : > { %1137 = vmatpush1.bf16.msra.mxu0 %v1136_v19  ;;  %1011 = vmatprep.subr.bf16.mxu1 %v1010_v20  ;;  %v464_v19 = vld [vmem:[%s1638_s22 + $0x6c0] sm:$0xff]  ;;  %v466_v20 = vld [vmem:[%s1638_s22 + $0x6d0] sm:$0xff]  ;;  %v1032_v28 = vpack.c.bf16 %v338_v18, %v336_v15  ;;  %v487_v11 = vld [vmem:[%s1638_s22 + $0x778] sm:$0xff] }
  0xba   : > { %1139 = vmatprep.subr.bf16.mxu0 %v1138_v24  ;;  %v243_v24 = vld [vmem:[#allocation2 + $0x18] sm:$0xff]  ;;  %793 = vmatprep.mubr.f32.mxu0 %v247_v27  ;;  %v1160_v29 = vpack.c.bf16 %v466_v20, %v464_v19  ;;  %v482_v7 = vld [vmem:[%s1638_s22 + $0x750] sm:$0xff]  ;;  %v356_v15 = vld [vmem:[%s1638_s22 + $0x360] sm:$0xff]  ;;  %v1178_v18 = vpack.c.bf16 %v487_v11, %v485_v10 }
  0xbb   : > { %651 = vmatprep.mubr.f32.mxu1 %v243_v24  ;;  %v1176_v13 = vpack.c.bf16 %v482_v7, %v480_v5  ;;  %v486_v19 = vld [vmem:[%s1638_s22 + $0x770] sm:$0xff]  ;;  %v361_v20 = vld [vmem:[%s1638_s22 + $0x388] sm:$0xff]  ;;  %v360_v27 = vld [vmem:[%s1638_s22 + $0x380] sm:$0xff] }
  0xbc   : > { %1013 = vmatpush1.bf16.msra.mxu1 %v1012_v30  ;;  %v1034_v30 = vpack.c.bf16 %v343_v23, %v341_v22  ;;  %v489_v22 = vld [vmem:[%s1638_s22 + $0x788] sm:$0xff]  ;;  %v491_v23 = vld [vmem:[%s1638_s22 + $0x798] sm:$0xff]  ;;  %v364_v39 = vld [vmem:[%s1638_s22 + $0x3a0] sm:$0xff] }
  0xbd   : > { %1141 = vmatpush1.bf16.msra.mxu0 %v1140_v31  ;;  %1015 = vmatprep.subr.bf16.mxu1 %v1014_v32  ;;  %v340_v31 = vld [vmem:[%s1638_s22 + $0x2e0] sm:$0xff]  ;;  %v342_v32 = vld [vmem:[%s1638_s22 + $0x2f0] sm:$0xff]  ;;  %v367_v33 = vld [vmem:[%s1638_s22 + $0x3b8] sm:$0xff] }
  0xbe   : > { %1143 = vmatprep.subr.bf16.mxu0 %v1142_v36  ;;  %v345_v36 = vld [vmem:[%s1638_s22 + $0x308] sm:$0xff]  ;;  %v1036_v40 = vpack.c.bf16 %v342_v32, %v340_v31  ;;  %v490_v31 = vld [vmem:[%s1638_s22 + $0x790] sm:$0xff]  ;;  %v495_v35 = vld [vmem:[%s1638_s22 + $0x7b8] sm:$0xff] }
  0xbf   : > { %v365_v32 = vld [vmem:[%s1638_s22 + $0x3a8] sm:$0xff]  ;;  %v371_v45 = vld [vmem:[%s1638_s22 + $0x3d8] sm:$0xff]  ;;  %v368_v51 = vld [vmem:[%s1638_s22 + $0x3c0] sm:$0xff] }
  0xc0   : > { %1017 = vmatpush1.bf16.msra.mxu1 %v1016_v42  ;;  %v1038_v42 = vpack.c.bf16 %v347_v37, %v345_v36  ;;  %v1058_v38 = vpack.c.bf16 %v367_v33, %v365_v32  ;;  %v499_v47 = vld [vmem:[%s1638_s22 + $0x7d8] sm:$0xff]  ;;  %v372_v63 = vld [vmem:[%s1638_s22 + $0x3e0] sm:$0xff]  ;;  %v246_v7 = vld [vmem:[#allocation2 + $0x30] sm:$0xff] }
  0xc1   : > { %1145 = vmatpush1.bf16.msra.mxu0 %v1144_v43  ;;  %1019 = vmatprep.subr.bf16.mxu1 %v1018_v44  ;;  %v344_v43 = vld [vmem:[%s1638_s22 + $0x300] sm:$0xff]  ;;  %v346_v44 = vld [vmem:[%s1638_s22 + $0x310] sm:$0xff]  ;;  %v375_v57 = vld [vmem:[%s1638_s22 + $0x3f8] sm:$0xff] }
  0xc2   : > { %1147 = vmatprep.subr.bf16.mxu0 %v1146_v48  ;;  %v349_v48 = vld [vmem:[%s1638_s22 + $0x328] sm:$0xff]  ;;  %v1040_v52 = vpack.c.bf16 %v346_v44, %v344_v43  ;;  %v494_v43 = vld [vmem:[%s1638_s22 + $0x7b0] sm:$0xff]  ;;  %v503_v59 = vld [vmem:[%s1638_s22 + $0x7f8] sm:$0xff] }
  0xc3   : > { %v369_v44 = vld [vmem:[%s1638_s22 + $0x3c8] sm:$0xff]  ;;  %v504_v11 = vld [vmem:[%s209_s27] sm:$0x3] }
  0xc4   : > { %1021 = vmatpush1.bf16.msra.mxu1 %v1020_v54  ;;  %v1042_v54 = vpack.c.bf16 %v351_v49, %v349_v48  ;;  %v1062_v50 = vpack.c.bf16 %v371_v45, %v369_v44 }
  0xc5   : > { %1149 = vmatpush1.bf16.msra.mxu0 %v1148_v55  ;;  %1023 = vmatprep.subr.bf16.mxu1 %v1022_v56  ;;  %v348_v55 = vld [vmem:[%s1638_s22 + $0x320] sm:$0xff]  ;;  %v350_v56 = vld [vmem:[%s1638_s22 + $0x330] sm:$0xff] }
  0xc6   : > { %1151 = vmatprep.subr.bf16.mxu0 %v1150_v60  ;;  %v353_v60 = vld [vmem:[%s1638_s22 + $0x348] sm:$0xff]  ;;  %v1044_v0 = vpack.c.bf16 %v350_v56, %v348_v55  ;;  %v498_v55 = vld [vmem:[%s1638_s22 + $0x7d0] sm:$0xff] }
  0xc7   : > { %v373_v56 = vld [vmem:[%s1638_s22 + $0x3e8] sm:$0xff] }
  0xc8   : > { %1025 = vmatpush1.bf16.msra.mxu1 %v1024_v2  ;;  %v1046_v2 = vpack.c.bf16 %v355_v61, %v353_v60  ;;  %v1066_v62 = vpack.c.bf16 %v375_v57, %v373_v56 }
  0xc9   : > { %1153 = vmatpush1.bf16.msra.mxu0 %v1152_v3  ;;  %1027 = vmatprep.subr.bf16.mxu1 %v1026_v4  ;;  %v352_v3 = vld [vmem:[%s1638_s22 + $0x340] sm:$0xff]  ;;  %v354_v4 = vld [vmem:[%s1638_s22 + $0x350] sm:$0xff] }
  0xca   : > { %1155 = vmatprep.subr.bf16.mxu0 %v1154_v8  ;;  %v357_v8 = vld [vmem:[%s1638_s22 + $0x368] sm:$0xff]  ;;  %v1048_v12 = vpack.c.bf16 %v354_v4, %v352_v3  ;;  %v502_v3 = vld [vmem:[%s1638_s22 + $0x7f0] sm:$0xff] }
  0xcc   : > { %1029 = vmatpush1.bf16.msra.mxu1 %v1028_v14  ;;  %v1050_v14 = vpack.c.bf16 %v359_v9, %v357_v8  ;;  %v506_v8 = vlaneseq }
  0xcd   : > { %1157 = vmatpush1.bf16.msra.mxu0 %v1156_v16  ;;  %1031 = vmatprep.subr.bf16.mxu1 %v1030_v17  ;;  %v358_v16 = vld [vmem:[%s1638_s22 + $0x370] sm:$0xff]  ;;  %v484_v17 = vld [vmem:[%s1638_s22 + $0x760] sm:$0xff] }
  0xce   : > { %1159 = vmatprep.subr.bf16.mxu0 %v1158_v21  ;;  %v363_v21 = vld [vmem:[%s1638_s22 + $0x398] sm:$0xff]  ;;  %v1052_v24 = vpack.c.bf16 %v358_v16, %v356_v15  ;;  %v1180_v25 = vpack.c.bf16 %v486_v19, %v484_v17  ;;  %v507_v9 = vshrl.u32 %v506_v8, 7 }
  0xcf   : > { %v1054_v26 = vpack.c.bf16 %v363_v21, %v361_v20 }
  0xd0   : > { %1033 = vmatpush1.bf16.msra.mxu1 %v1032_v28  ;;  %v362_v28 = vld [vmem:[%s1638_s22 + $0x390] sm:$0xff]  ;;  %v508_v10 = vsub.s32 0, %v507_v9 }
  0xd1   : > { %1161 = vmatpush1.bf16.msra.mxu0 %v1160_v29  ;;  %1035 = vmatprep.subr.bf16.mxu1 %v1034_v30  ;;  %v488_v29 = vld [vmem:[%s1638_s22 + $0x780] sm:$0xff]  ;;  %v1182_v30 = vpack.c.bf16 %v491_v23, %v489_v22  ;;  %v1056_v36 = vpack.c.bf16 %v362_v28, %v360_v27 }
  0xd2   : > { %1163 = vmatprep.subr.bf16.mxu0 %v1162_v34  ;;  %v493_v34 = vld [vmem:[%s1638_s22 + $0x7a8] sm:$0xff]  ;;  %v1184_v37 = vpack.c.bf16 %v490_v31, %v488_v29 }
  0xd4   : > { %1037 = vmatpush1.bf16.msra.mxu1 %v1036_v40  ;;  %v366_v40 = vld [vmem:[%s1638_s22 + $0x3b0] sm:$0xff] }
  0xd5   : > { %1165 = vmatpush1.bf16.msra.mxu0 %v1164_v41  ;;  %1039 = vmatprep.subr.bf16.mxu1 %v1038_v42  ;;  %v492_v41 = vld [vmem:[%s1638_s22 + $0x7a0] sm:$0xff]  ;;  %v1186_v42 = vpack.c.bf16 %v495_v35, %v493_v34  ;;  %v1060_v48 = vpack.c.bf16 %v366_v40, %v364_v39 }
  0xd6   : > { %1167 = vmatprep.subr.bf16.mxu0 %v1166_v46  ;;  %v497_v46 = vld [vmem:[%s1638_s22 + $0x7c8] sm:$0xff]  ;;  %v1188_v49 = vpack.c.bf16 %v494_v43, %v492_v41 }
  0xd8   : > { %1041 = vmatpush1.bf16.msra.mxu1 %v1040_v52  ;;  %v370_v52 = vld [vmem:[%s1638_s22 + $0x3d0] sm:$0xff] }
  0xd9   : > { %1169 = vmatpush1.bf16.msra.mxu0 %v1168_v53  ;;  %1043 = vmatprep.subr.bf16.mxu1 %v1042_v54  ;;  %v496_v53 = vld [vmem:[%s1638_s22 + $0x7c0] sm:$0xff]  ;;  %v1190_v54 = vpack.c.bf16 %v499_v47, %v497_v46  ;;  %v1064_v60 = vpack.c.bf16 %v370_v52, %v368_v51 }
  0xda   : > { %1171 = vmatprep.subr.bf16.mxu0 %v1170_v58  ;;  %v501_v58 = vld [vmem:[%s1638_s22 + $0x7e8] sm:$0xff]  ;;  %v1192_v61 = vpack.c.bf16 %v498_v55, %v496_v53 }
  0xdc   : > { %1045 = vmatpush1.bf16.msra.mxu1 %v1044_v0  ;;  %v374_v0 = vld [vmem:[%s1638_s22 + $0x3f0] sm:$0xff] }
  0xdd   : > { %1173 = vmatpush1.bf16.msra.mxu0 %v1172_v1  ;;  %1047 = vmatprep.subr.bf16.mxu1 %v1046_v2  ;;  %v1194_v1 = vpack.c.bf16 %v503_v59, %v501_v58  ;;  %v500_v2 = vld [vmem:[%s1638_s22 + $0x7e0] sm:$0xff]  ;;  %v1068_v4 = vpack.c.bf16 %v374_v0, %v372_v63 }
  0xde   : > { %1175 = vmatprep.subr.bf16.mxu0 %v1174_v6  ;;  %v1196_v5 = vpack.c.bf16 %v502_v3, %v500_v2  ;;  %v242_v6 = vld [vmem:[#allocation2 + $0x10] sm:$0xff] }
  0xe0   : > { %1049 = vmatpush1.bf16.msra.mxu1 %v1048_v12  ;;  %v512_v12 = vsub.s32 1, %v507_v9 }
  0xe1   : > { %1177 = vmatpush1.bf16.msra.mxu0 %v1176_v13  ;;  %1051 = vmatprep.subr.bf16.mxu1 %v1050_v14  ;;  %v509_v13 = vrot.slane %v504_v11, %v508_v10 }
  0xe2   : > { %1179 = vmatprep.subr.bf16.mxu0 %v1178_v18  ;;  %v513_v14 = vrot.slane %v504_v11, %v512_v12 }
  0xe4   : > { %1053 = vmatpush1.bf16.msra.mxu1 %v1052_v24 }
  0xe5   : > { %1181 = vmatpush1.bf16.msra.mxu0 %v1180_v25  ;;  %1055 = vmatprep.subr.bf16.mxu1 %v1054_v26 }
  0xe6   : > { %1183 = vmatprep.subr.bf16.mxu0 %v1182_v30 }
  0xe8   : > { %1057 = vmatpush1.bf16.msra.mxu1 %v1056_v36 }
  0xe9   : > { %1185 = vmatpush1.bf16.msra.mxu0 %v1184_v37  ;;  %1059 = vmatprep.subr.bf16.mxu1 %v1058_v38 }
  0xea   : > { %1187 = vmatprep.subr.bf16.mxu0 %v1186_v42 }
  0xec   : > { %1061 = vmatpush1.bf16.msra.mxu1 %v1060_v48 }
  0xed   : > { %1189 = vmatpush1.bf16.msra.mxu0 %v1188_v49  ;;  %1063 = vmatprep.subr.bf16.mxu1 %v1062_v50 }
  0xee   : > { %1191 = vmatprep.subr.bf16.mxu0 %v1190_v54 }
  0xf0   : > { %1065 = vmatpush1.bf16.msra.mxu1 %v1064_v60 }
  0xf1   : > { %1193 = vmatpush1.bf16.msra.mxu0 %v1192_v61  ;;  %1067 = vmatprep.subr.bf16.mxu1 %v1066_v62 }
  0xf2   : > { %1195 = vmatprep.subr.bf16.mxu0 %v1194_v1 }
  0xf4   : > { %1069 = vmatpush1.bf16.msra.mxu1 %v1068_v4 }
  0xf5   : > { %1197 = vmatpush1.bf16.msra.mxu0 %v1196_v5 }
  0xf7   : > { %652 = vmatmul.mubr.f32.vlgmr.msra.gmra.mrb[0].mxu1 %v242_v6 }
  0xf8   : > { %794 = vmatmul.mubr.f32.vlgmr.msra.gmra.mrb[0].mxu0 %v246_v7 }
 0x1ca   : > { %v653_v15 = vpop.f32.mrb[0].mxu1 }
 0x1cb   : > { %v1198_v16 = vadd.f32 %v653_v15, %v509_v13  ;;  %v795_v17 = vpop.f32.mrb[0].mxu0  ;;  %v655_v18 = vpop.f32.mrb[1].mxu1 }
 0x1cc   : > { %v1200_v19 = vadd.f32 %v655_v18, %v513_v14  ;;  %v797_v20 = vpop.f32.mrb[1].mxu0 }
 0x1cd   : > { %v1199_v21 = vadd.f32 %v1198_v16, %v795_v17 }
 0x1ce   : > { %v1201_v22 = vadd.f32 %v1200_v19, %v797_v20 }
 0x1cf   : > { %800 = vst [vmem:[%s236_s20] sm:$0xff] %v1199_v21 }
 0x1d0   : > { %801 = vst [vmem:[%s236_s20 + $0x8] sm:$0xff] %v1201_v22 }
 0x1d1   : > { %1372 = shalt.err (!%p1369_p1)
}
 0x1d2   : > { %s1373_s17 = scalar_lea.hbm %s1906_s5, 256  ;;  %s1377_s21 = scalar_lea.hbm %s1952_s3, 1024 }
 0x1d3   : > { %p1374_p5 = scmp.ne.s32.totalorder %s1906_s5, %s1373_s17  ;;  %p1378_p6 = scmp.lt.u32.totalorder %s1906_s5, %s1952_s3 }
 0x1d4   : > { %p1379_p8 = scmp.lt.u32.totalorder %s1377_s21, %s1373_s17  ;;  %p1381_p11 = scmp.lt.u32.totalorder %s1373_s17, %s1906_s5 }
 0x1d5   : > { %p1375_p4 = pnand %p1374_p5, %p1973_p3 }
 0x1d6   : > { %p1380_p13 = por %p1379_p8, %p1378_p6 }
 0x1d7   : > { %p1376_p2 = pneg %p1375_p4 }
 0x1d8   : > { %p1382_p0 = por %p1381_p11, %p1380_p13 }
 0x1da   : > { %p1383_p10 = pnand %p1382_p0, %p1376_p2 }
 0x1dc   : > { %1386 = shalt.err (!%p1383_p10)
}
 0x1dd   : > { %1214 = dma.vmem_to_hbm [thread:$0]  (%p1973_p3), %s1908_s23, 256, %s1906_s5, %s803_s6  }
 0x1de PF: > { %p1234_p12 = scmp.ge.s32.totalorder %s1429_s15, 2  ;;  %s829_s27 = sand.u32 1, %s1417_s12  }
 0x1df   : > { %p1974_p9 = scmp.ne.s32.totalorder %s1963_s28, 0  ;;  %s830_s4 = scalar_lea.sflag [#allocation4], %s829_s27 }
 0x1e1   : > { %p1228_p7 = pnand %p1234_p12, %p1974_p9 }
 0x1e3   : > { %1412 = dma.done.wait (!%p1228_p7), %s830_s4, 256  }
 0x1e4   : > { %1414 = vsyncadd (!%p1228_p7), %s830_s4, 4294967040  ;;  %p17_p1 = scmp.ge.s32.totalorder %s1479_s16, 6   ;;  %s1975_s12 = smov %s1421_s13 }
 0x1e5   : > { %s1976_s13 = smov %s1425_s14  ;;  %s1977_s14 = smov %s1489_s19 }
 0x1e6   : > { %s1978_s15 = smov %s1479_s16  ;;  %19 = sbr.rel (!%p17_p1) target bundleno = 6 (0x6), region = 93 }
 0x1ed   :  { %835 = vsyncpa [#allocation3], 1 }
 0x1ee   :  { %837 = vsyncpa [#allocation3 + $0x1], 1 }
 0x1ef   :  { %838 = vsyncpa [#allocation6], 1 }
 0x1f0   :  { %840 = vsyncpa [#allocation6 + $0x1], 1 }
 0x1f1   :  { %841 = vsyncpa [#allocation4], 1 }
 0x1f2   :  { %843 = vsyncpa [#allocation4 + $0x1], 1 }

</bundles_post_ra>
